<compile_context>
chip_gen: v7x
topology: tpu7x:2x2x1
jax: 0.10.0
libtpu: 0.0.40
codegen_flags: <defaults>
</compile_context>

<pallas_src>
import math

import jax
import jax.numpy as jnp
from jax.experimental import pallas as pl
from jax.experimental.pallas import tpu as pltpu


def _gap_fc_kernel(x_ref, g_ref, w_ref, b_ref, o_ref, acc_ref):
    # x_ref  : (TR, TS)   current input tile (rows = flattened (batch, chan))
    # g_ref  : (TB, TR)   batch gather matrix (1.0 where row belongs to batch)
    # w_ref  : (TR, OUT)  W.T / (H*W), replicated TB times along rows (f32)
    # b_ref  : (1, OUT)   bias (f32)
    # o_ref  : (TB, OUT)  output block for this row tile
    # acc_ref: (TR, 1)    running f32 spatial sum per row
    s = pl.program_id(1)

    @pl.when(s == 0)
    def _init():
        acc_ref[...] = jnp.zeros_like(acc_ref)

    # Streaming reduce over the lane (spatial) axis, accumulated in f32.
    acc_ref[...] += jnp.sum(x_ref[...], axis=-1, keepdims=True,
                            dtype=jnp.float32)

    @pl.when(s == pl.num_programs(1) - 1)
    def _finalize():
        # contrib[r, o] = pooled_sum[r] * (W.T / (H*W))[r % C, o]
        contrib = acc_ref[...] * w_ref[...]                    # (TR, OUT)
        # out[b, o] = sum_{r : r // C == b} contrib[r, o] + bias[o]
        y = jnp.dot(g_ref[...], contrib,
                    preferred_element_type=jnp.float32)        # (TB, OUT)
        o_ref[...] = (y + b_ref[...]).astype(o_ref.dtype)


def _round_up(v, m):
    return (v + m - 1) // m * m


def gap_layer(x, weight, bias, *, rows_block=None, spatial_block=None):
    """Global average pool (NCHW) + Linear as a single Pallas TPU kernel.

    x: (B, C, H, W); weight: (OUT, C) (PyTorch nn.Linear layout); bias: (OUT,).
    Returns (B, OUT) in x.dtype.
    """
    B, C, H, W = x.shape
    out_c, c_in = weight.shape
    assert c_in == C
    S = H * W
    R = B * C

    # ---- tile selection --------------------------------------------------
    base_rows = (C * 8) // math.gcd(C, 8)            # lcm(C, 8): 8-aligned, whole batches
    if rows_block is None:
        r_single = _round_up(R, base_rows)
        # Single row tile when small; otherwise 8 batches per tile so the
        # output block's sublane dim stays a multiple of 8.
        rows_block = r_single if r_single <= 1024 else 8 * C
    rows_block = _round_up(rows_block, base_rows)
    R_pad = _round_up(R, rows_block)
    TB = rows_block // C                              # batches per row tile
    B_pad = R_pad // C

    if spatial_block is None:
        spatial_block = 1024                          # lane-dense, modest VMEM on all gens
    spatial_block = min(_round_up(spatial_block, 128), _round_up(S, 128))
    S_pad = _round_up(S, spatial_block)

    # ---- host-side prep (cheap, one-off) ----------------------------------
    x2d = x.reshape(R, S)                             # dense (B*C, H*W) slab
    if R_pad != R or S_pad != S:
        # Zero padding does not change the sums; the 1/(H*W) scale below uses
        # the true spatial size.
        x2d = jnp.pad(x2d, ((0, R_pad - R), (0, S_pad - S)))

    wt = weight.astype(jnp.float32).T / jnp.float32(S)          # (C, OUT), scale folded in
    w_rep = jnp.tile(wt, (TB, 1))                               # (rows_block, OUT)
    b2 = bias.astype(jnp.float32).reshape(1, out_c)             # (1, OUT)
    g = (jnp.arange(rows_block)[None, :] // C
         == jnp.arange(TB)[:, None]).astype(jnp.float32)        # (TB, rows_block)

    grid = (R_pad // rows_block, S_pad // spatial_block)

    bytes_accessed = (x2d.size * x2d.dtype.itemsize
                      + w_rep.size * 4 + g.size * 4 + b2.size * 4
                      + B_pad * out_c * x.dtype.itemsize)
    flops = (R_pad * S_pad                                       # streaming sums
             + grid[0] * (2 * TB * rows_block * out_c            # finalize matmul
                          + rows_block * out_c + TB * out_c))

    out = pl.pallas_call(
        _gap_fc_kernel,
        out_shape=jax.ShapeDtypeStruct((B_pad, out_c), x.dtype),
        grid_spec=pltpu.PrefetchScalarGridSpec(
            num_scalar_prefetch=0,
            grid=grid,
            in_specs=[
                pl.BlockSpec((rows_block, spatial_block), lambda r, s: (r, s)),
                pl.BlockSpec((TB, rows_block), lambda r, s: (0, 0)),
                pl.BlockSpec((rows_block, out_c), lambda r, s: (0, 0)),
                pl.BlockSpec((1, out_c), lambda r, s: (0, 0)),
            ],
            out_specs=pl.BlockSpec((TB, out_c), lambda r, s: (r, 0)),
            scratch_shapes=[pltpu.VMEM((rows_block, 1), jnp.float32)],
        ),
        compiler_params=pltpu.CompilerParams(
            dimension_semantics=("parallel", "arbitrary"),
            vmem_limit_bytes=32 * 1024 * 1024,
        ),
        cost_estimate=pl.CostEstimate(
            flops=int(flops), transcendentals=0,
            bytes_accessed=int(bytes_accessed)),
    )(x2d, g, w_rep, b2)

    return out[:B] if B_pad != B else out


if __name__ == "__main__":
    key = jax.random.PRNGKey(0)
    kx, kw, kb = jax.random.split(key, 3)

    B, C, H, W = 2, 4, 16, 16
    OUT = 8

    x = jax.random.normal(kx, (B, C, H, W), dtype=jnp.float32)

    # Deterministic parameter init (PyTorch nn.Linear style uniform bound).
    bound = 1.0 / math.sqrt(C)
    weight = jax.random.uniform(kw, (OUT, C), minval=-bound, maxval=bound,
                                dtype=jnp.float32)
    bias = jax.random.uniform(kb, (OUT,), minval=-bound, maxval=bound,
                              dtype=jnp.float32)

    # Reference in plain JAX (same semantics as the PyTorch module).
    ref = jnp.mean(x, axis=(2, 3)) @ weight.T + bias

    # Default tiling (single spatial step at this size).
    out = jax.block_until_ready(gap_layer(x, weight, bias))
    assert out.shape == (B, OUT)
    assert jnp.allclose(out, ref, atol=1e-5, rtol=1e-5)

    # Force multiple spatial grid steps to exercise the accumulate/finalize path.
    out2 = jax.block_until_ready(gap_layer(x, weight, bias, spatial_block=128))
    assert jnp.allclose(out2, ref, atol=1e-5, rtol=1e-5)

    print("KERNEL_OK")
</pallas_src>

<mosaic_0001>
module attributes {stable_mosaic.version = 11 : i64} {
  func.func @_gap_fc_kernel(%arg0: i32, %arg1: i32, %arg2: memref<8x256xf32, #tpu.memory_space<vmem>>, %arg3: memref<2x8xf32, #tpu.memory_space<vmem>>, %arg4: memref<8x8xf32, #tpu.memory_space<vmem>>, %arg5: memref<1x8xf32, #tpu.memory_space<vmem>>, %arg6: memref<2x8xf32, #tpu.memory_space<vmem>>, %arg7: memref<8x1xf32, #tpu.memory_space<vmem>>) attributes {dimension_semantics = [#tpu.dimension_semantics<parallel>, #tpu.dimension_semantics<arbitrary>], iteration_bounds = array<i64: 1, 1>, scalar_prefetch = 0 : i64, scratch_operands = 1 : i64, tpu.core_type = #tpu.core_type<tc>, window_params = [{transform_indices = @transform_0, window_bounds = array<i64: 8, 256>}, {pipeline_mode = #tpu.pipeline_mode<synchronous>, transform_indices = @transform_1, window_bounds = array<i64: 2, 8>}, {pipeline_mode = #tpu.pipeline_mode<synchronous>, transform_indices = @transform_2, window_bounds = array<i64: 8, 8>}, {pipeline_mode = #tpu.pipeline_mode<synchronous>, transform_indices = @transform_3, window_bounds = array<i64: 1, 8>}, {transform_indices = @transform_4, window_bounds = array<i64: 2, 8>}]} {
    %c0_i32 = arith.constant 0 : i32
    %0 = arith.cmpi eq, %arg1, %c0_i32 : i32
    %1 = arith.extui %0 : i1 to i32
    %c0_i32_0 = arith.constant 0 : i32
    %2 = arith.cmpi ne, %1, %c0_i32_0 : i32
    scf.if %2 {
      %cst_8 = arith.constant 0.000000e+00 : f32
      %12 = vector.broadcast %cst_8 : f32 to vector<8x1xf32>
      %c0_9 = arith.constant 0 : index
      %c0_10 = arith.constant 0 : index
      %13 = vector.load %arg7[%c0_9, %c0_10] : memref<8x1xf32, #tpu.memory_space<vmem>>, vector<8x1xf32>
      tpu.vector_store %arg7[%c0_9, %c0_10], %12 {strides = array<i32>} : memref<8x1xf32, #tpu.memory_space<vmem>>, vector<8x1xf32>,
    } else {
    }
    %c0 = arith.constant 0 : index
    %c0_1 = arith.constant 0 : index
    %3 = vector.load %arg7[%c0, %c0_1] : memref<8x1xf32, #tpu.memory_space<vmem>>, vector<8x1xf32>
    %c0_2 = arith.constant 0 : index
    %c0_3 = arith.constant 0 : index
    %4 = vector.load %arg2[%c0_2, %c0_3] : memref<8x256xf32, #tpu.memory_space<vmem>>, vector<8x256xf32>
    %cst = arith.constant dense<0.000000e+00> : vector<8xf32>
    %5 = vector.multi_reduction <add>, %4, %cst [1] : vector<8x256xf32> to vector<8xf32>
    %6 = vector.shape_cast %5 : vector<8xf32> to vector<8x1xf32>
    %7 = arith.addf %3, %6 : vector<8x1xf32>
    %c0_4 = arith.constant 0 : index
    %c0_5 = arith.constant 0 : index
    %8 = vector.load %arg7[%c0_4, %c0_5] : memref<8x1xf32, #tpu.memory_space<vmem>>, vector<8x1xf32>
    tpu.vector_store %arg7[%c0_4, %c0_5], %7 {strides = array<i32>} : memref<8x1xf32, #tpu.memory_space<vmem>>, vector<8x1xf32>,
    %c0_i32_6 = arith.constant 0 : i32
    %9 = arith.cmpi eq, %arg1, %c0_i32_6 : i32
    %10 = arith.extui %9 : i1 to i32
    %c0_i32_7 = arith.constant 0 : i32
    %11 = arith.cmpi ne, %10, %c0_i32_7 : i32
    scf.if %11 {
      %c0_8 = arith.constant 0 : index
      %c0_9 = arith.constant 0 : index
      %12 = vector.load %arg7[%c0_8, %c0_9] : memref<8x1xf32, #tpu.memory_space<vmem>>, vector<8x1xf32>
      %c0_10 = arith.constant 0 : index
      %c0_11 = arith.constant 0 : index
      %13 = vector.load %arg4[%c0_10, %c0_11] : memref<8x8xf32, #tpu.memory_space<vmem>>, vector<8x8xf32>
      %14 = vector.broadcast %12 : vector<8x1xf32> to vector<8x8xf32>
      %15 = arith.mulf %14, %13 : vector<8x8xf32>
      %c0_12 = arith.constant 0 : index
      %c0_13 = arith.constant 0 : index
      %16 = vector.load %arg3[%c0_12, %c0_13] : memref<2x8xf32, #tpu.memory_space<vmem>>, vector<2x8xf32>
      %cst_14 = arith.constant dense<0.000000e+00> : vector<2x8xf32>
      %17 = tpu.matmul %16, %15, %cst_14 {dimension_numbers = #tpu.dot_dimension_numbers<[1], [0], [0], [1], [0, 0, 1, 1], [], []>} : vector<2x8xf32>, vector<8x8xf32>, vector<2x8xf32> -> vector<2x8xf32>
      %c0_15 = arith.constant 0 : index
      %c0_16 = arith.constant 0 : index
      %18 = vector.load %arg5[%c0_15, %c0_16] : memref<1x8xf32, #tpu.memory_space<vmem>>, vector<1x8xf32>
      %19 = vector.broadcast %18 : vector<1x8xf32> to vector<2x8xf32>
      %20 = arith.addf %17, %19 : vector<2x8xf32>
      %c0_17 = arith.constant 0 : index
      %c0_18 = arith.constant 0 : index
      %21 = vector.load %arg6[%c0_17, %c0_18] : memref<2x8xf32, #tpu.memory_space<vmem>>, vector<2x8xf32>
      tpu.vector_store %arg6[%c0_17, %c0_18], %20 {strides = array<i32>} : memref<2x8xf32, #tpu.memory_space<vmem>>, vector<2x8xf32>,
    } else {
    }
    return
  }
  func.func @transform_0(%arg0: i32, %arg1: i32) -> (i32, i32) {
    %c0_i32 = arith.constant 0 : i32
    return %arg0, %arg1 : i32, i32
  }
  func.func @transform_1(%arg0: i32, %arg1: i32) -> (i32, i32) {
    %c0_i32 = arith.constant 0 : i32
    %c0_i32_0 = arith.constant 0 : i32
    %c0_i32_1 = arith.constant 0 : i32
    return %c0_i32, %c0_i32_0 : i32, i32
  }
  func.func @transform_2(%arg0: i32, %arg1: i32) -> (i32, i32) {
    %c0_i32 = arith.constant 0 : i32
    %c0_i32_0 = arith.constant 0 : i32
    %c0_i32_1 = arith.constant 0 : i32
    return %c0_i32, %c0_i32_0 : i32, i32
  }
  func.func @transform_3(%arg0: i32, %arg1: i32) -> (i32, i32) {
    %c0_i32 = arith.constant 0 : i32
    %c0_i32_0 = arith.constant 0 : i32
    %c0_i32_1 = arith.constant 0 : i32
    return %c0_i32, %c0_i32_0 : i32, i32
  }
  func.func @transform_4(%arg0: i32, %arg1: i32) -> (i32, i32) {
    %c0_i32 = arith.constant 0 : i32
    %c0_i32_0 = arith.constant 0 : i32
    return %arg0, %c0_i32 : i32, i32
  }
}

</mosaic_0001>

<bundles_post_ra>
// kernel: tpu_custom_call.1
= control target key start
LH: loop header
LB: loop body
LE: loop exit
PB: predicated region body
PF: predicated region fallthrough
CT: control target
= control target key end

     0   :  { %9 = vsyncpa [#allocation4], 0  ;;  %s329_s0 = inlined_call_operand.hbm [shape: f32[8,256], index: 0, kind: input, shape index: {}]   ;;  %s330_s1 = inlined_call_operand.vmem [shape: f32[2,8], index: 1, kind: input, shape index: {}]   ;;  %s331_s2 = inlined_call_operand.hbm [shape: f32[8,8], index: 2, kind: input, shape index: {}]   ;;  %s332_s3 = inlined_call_operand.vmem [shape: f32[1,8], index: 3, kind: input, shape index: {}]   ;;  %s333_s4 = inlined_call_operand.hbm [shape: f32[2,8], index: 4, kind: output, shape index: {}]  }
   0x1   :  { %10 = vsyncpa [#allocation7], 0 }
   0x2   :  { %11 = vsyncpa [#allocation5], 0  ;;  %s256_s15 = smov [#allocation3]   ;;  %s257_s17 = smov [#allocation6]  }
   0x3   :  { %s18_s16 = sshll.u32 %s256_s15, 4  ;;  %s30_s18 = sshll.u32 %s257_s17, 4  ;;  %s19_s16 = int_to_ptr.vmem [resolvable:$true] %s18_s16  ;;  %s31_s18 = int_to_ptr.vmem [resolvable:$true] %s30_s18 }
   0x4   :  { %s184_s21 = scalar_lea.hbm %s329_s0, 256 }
   0x5   :  { %p185_p0 = scmp.ne.s32.totalorder %s329_s0, %s184_s21  ;;  %p188_p1 = scmp.lt.u32.totalorder %s184_s21, %s329_s0 }
   0x7   :  { %p190_p2 = pnand %p188_p1, %p185_p0 }
   0x9   :  { %193 = shalt.err (!%p190_p2)
}
   0xa   :  { %s194_s26 = scalar_lea.vmem %s19_s16, 256  ;;  %p199_p4 = scmp.lt.s32.totalorder %s19_s16, %s19_s16 }
   0xb   :  { %p195_p3 = scmp.ne.s32.totalorder %s19_s16, %s194_s26  ;;  %p200_p5 = scmp.lt.s32.totalorder %s194_s26, %s194_s26 }
   0xd   :  { %p201_p6 = por %p200_p5, %p199_p4 }
   0xf   :  { %p202_p7 = pnand %p201_p6, %p195_p3 }
  0x11   :  { %205 = shalt.err (!%p202_p7)
}
  0x12   :  { %21 = dma.hbm_to_vmem [thread:$0]  %s329_s0, 256, %s19_s16, [#allocation4]  }
  0x13   :  { %s206_s5 = scalar_lea.hbm %s331_s2, 128 }
  0x14   :  { %p207_p8 = scmp.ne.s32.totalorder %s331_s2, %s206_s5  ;;  %p210_p9 = scmp.lt.u32.totalorder %s206_s5, %s331_s2 }
  0x16   :  { %p212_p10 = pnand %p210_p9, %p207_p8 }
  0x18   :  { %215 = shalt.err (!%p212_p10)
}
  0x19   :  { %s216_s10 = scalar_lea.vmem %s31_s18, 128  ;;  %p221_p12 = scmp.lt.s32.totalorder %s31_s18, %s31_s18 }
  0x1a   :  { %p217_p11 = scmp.ne.s32.totalorder %s31_s18, %s216_s10  ;;  %p222_p13 = scmp.lt.s32.totalorder %s216_s10, %s216_s10 }
  0x1c   :  { %p223_p0 = por %p222_p13, %p221_p12 }
  0x1e   :  { %p224_p1 = pnand %p223_p0, %p217_p11 }
  0x20   :  { %227 = shalt.err (!%p224_p1)
}
  0x21   :  { %33 = dma.hbm_to_vmem [thread:$0]  %s331_s2, 128, %s31_s18, [#allocation7]  }
  0x22   :  { %250 = dma.done.wait [#allocation4], 256  }
  0x23   :  { %251 = vsyncadd [#allocation4], 4294967040 }
  0x24   :  { %252 = dma.done.wait [#allocation7], 128  }
  0x25   :  { %253 = vsyncadd [#allocation7], 4294967168  ;;  %vm46_vm0 = vcmask 7168   ;;  %v258_v0 = vmov 0.0   ;;  %v49_v1 = vld [vmem:[#allocation3] sm:$0xff]  ;;  %v50_v2 = vld [vmem:[#allocation3 + $0x8] sm:$0xff] }
  0x26   :  { %47 = vst.msk [vmem:[#allocation2] sm:$0xff] %vm46_vm0, %v258_v0  ;;  %172 = vmatprep.subr.mxu0 %v258_v0  ;;  %v51_v3 = vadd.f32 %v50_v2, %v49_v1  ;;  %v259_v4 = vmov 0   ;;  %vm260_vm1 = vmmov 0   ;;  %v61_v9 = vld [vmem:[#allocation6] sm:$0xff]  ;;  %v68_v12 = vld [vmem:[%s330_s1] sm:$0x3] }
  0x27   :  { %183 = vset.pattern.permute.xlu0 %v259_v4  ;;  %174 = vmatprep.mubr.msk.f32.mxu0 %vm260_vm1, %v258_v0  ;;  %vm76_vm2 = vcmask 64512   ;;  %v168_v13 = vld [vmem:[%s332_s3] ss:$0 sm:$0xff]  ;;  %s261_s15 = smov [#allocation8]   ;;  %vm150_vm3 = vcmask 58368  }
  0x28   :  { %52 = vadd.xlane.f32.xlu0 %v51_v3  ;;  %s158_s16 = sshll.u32 %s261_s15, 4  ;;  %s159_s16 = int_to_ptr.vmem [resolvable:$true] %s158_s16 }
  0x29   :  { %s228_s17 = scalar_lea.vmem %s159_s16, 32  ;;  %p233_p3 = scmp.lt.s32.totalorder %s159_s16, %s159_s16 }
  0x2a   :  { %p229_p2 = scmp.ne.s32.totalorder %s159_s16, %s228_s17  ;;  %p234_p4 = scmp.lt.s32.totalorder %s228_s17, %s228_s17 }
  0x2c   :  { %p235_p5 = por %p234_p4, %p233_p3 }
  0x2d   :  { %v48_v5 = vld [vmem:[#allocation2] sm:$0xff] }
  0x2e   :  { %p236_p6 = pnand %p235_p5, %p229_p2 }
  0xb5   :  { %v53_v6 = vpop.xlane.xlu0 %52 }
  0xb6   :  { %v54_v7 = vadd.f32 %v53_v6, %v48_v5 }
  0xb8   :  { %56 = vst.msk [vmem:[#allocation2] sm:$0xff] %vm46_vm0, %v54_v7 }
  0xbf   :  { %v60_v8 = vld [vmem:[#allocation2] sm:$0xff] }
  0xc0   :  { %64 = vperm.xlu0 %183, %v60_v8  }
 0x13f   :  { %v65_v10 = vpop.permute.xlu0 %64 }
 0x140   :  { %v67_v11 = vmul.f32 %v65_v10, %v61_v9 }
 0x142   :  { %173 = vmatpush3.msra.mxu0 %v67_v11 }
 0x143   :  { %175 = vmatmul.mubr.msk.f32.vlgmr.msra.gmra.mrb[0].mxu0 %vm76_vm2, %v68_v12 }
 0x216   :  { %v146_v14 = vpop.f32.mrb[0].mxu0 }
 0x217   :  { %v147_v15 = vadd.f32 %v168_v13, %v146_v14  ;;  %v176_v16 = vpop.f32.mrb[1].mxu0 }
 0x219   :  { %151 = vst.msk [vmem:[#allocation8] sm:$0x3] %vm150_vm3, %v147_v15 }
 0x21a   :  { %239 = shalt.err (!%p236_p6)
}
 0x21b   :  { %s240_s19 = scalar_lea.hbm %s333_s4, 32 }
 0x21c   :  { %p241_p7 = scmp.ne.s32.totalorder %s333_s4, %s240_s19  ;;  %p244_p8 = scmp.lt.u32.totalorder %s240_s19, %s333_s4 }
 0x21e   :  { %p246_p9 = pnand %p244_p8, %p241_p7 }
 0x220   :  { %249 = shalt.err (!%p246_p9)
}
 0x221   :  { %161 = dma.vmem_to_hbm [thread:$0]  %s159_s16, 32, %s333_s4, [#allocation5]  }
 0x222   :  { %254 = dma.done.wait [#allocation5], 32  }
 0x223   :  { %255 = vsyncadd [#allocation5], 4294967264 }
 0x224   :  { %165 = vsyncpa [#allocation4], 1 }
 0x225   :  { %166 = vsyncpa [#allocation7], 1 }
 0x226   :  { %167 = vsyncpa [#allocation5], 1 }

</bundles_post_ra>
